<compile_context>
chip_gen: v6e
topology: v6e:2x2x1
jax: 0.10.0
libtpu: 0.0.40
codegen_flags: <defaults>
</compile_context>

<pallas_src>
import functools

import jax
import jax.numpy as jnp
import numpy as np
from jax.experimental import pallas as pl
from jax.experimental.pallas import tpu as pltpu

# ---------------- problem sizes ----------------
N_NODES = 200      # fixed by the classifier Linear(200, 100)
NFEAT   = 16
NHID    = 32
NCLASS  = 8
BATCH   = 2        # Siamese: (data1, data2)
H_CLS1  = 100
H_CLS2  = 50
N_OUT   = 10


# ---------------- Pallas kernel ----------------
def siamese_sage_kernel(at_ref, xt_ref, w1_ref, b1_ref, w2_ref, b2_ref,
                        wc1_ref, bc1_ref, wc2_ref, bc2_ref, wc3_ref, bc3_ref,
                        out_ref, *, gb):
    """Processes `gb` graphs per grid step, everything in transposed (feat, node)
    orientation so activations are lane-dense and no in-kernel transpose is needed."""
    C = out_ref.shape[1]                                   # nclass

    yts = []
    for g in range(gb):                                    # independent chains -> interleaved
        AT = at_ref[g]                                     # (N, N)  bf16, A_norm^T
        xT = xt_ref[g]                                     # (F, N)  bf16, x^T

        # ---- SAGE layer 1 (fused neighbour/root projection, transposed) ----
        agg1T = jnp.dot(xT, AT, preferred_element_type=jnp.float32)        # (F, N) f32
        t1T = jnp.concatenate([agg1T.astype(jnp.bfloat16), xT], axis=0)    # (2F, N) bf16
        hT = jnp.dot(w1_ref[...], t1T,
                     preferred_element_type=jnp.float32) + b1_ref[...]     # (H, N) f32
        hT = jnp.maximum(hT, 0.0)          # relu; dropout = identity at inference
        hTb = hT.astype(jnp.bfloat16)

        # ---- SAGE layer 2 ----
        agg2T = jnp.dot(hTb, AT, preferred_element_type=jnp.float32)       # (H, N) f32
        t2T = jnp.concatenate([agg2T.astype(jnp.bfloat16), hTb], axis=0)   # (2H, N) bf16
        yT = jnp.dot(w2_ref[...], t2T,
                     preferred_element_type=jnp.float32) + b2_ref[...]     # (C, N) f32
        yts.append(yT)

    # ---- classifier, batched across the gb graphs of this step ----
    # y^T is already the classifier input (torch does classifier(y.T)); stacking the
    # graphs along sublanes keeps lane widths of 200 / 100 / 50 on every matmul.
    yc = (yts[0] if gb == 1 else jnp.concatenate(yts, axis=0)).astype(jnp.bfloat16)
    z = jnp.dot(yc, wc1_ref[...],
                preferred_element_type=jnp.float32) + bc1_ref[...]          # (gb*C, 100)
    z = jnp.maximum(z, 0.0)
    z = jnp.dot(z.astype(jnp.bfloat16), wc2_ref[...],
                preferred_element_type=jnp.float32) + bc2_ref[...]          # (gb*C, 50)
    z = jnp.maximum(z, 0.0)
    z = jnp.dot(z.astype(jnp.bfloat16), wc3_ref[...],
                preferred_element_type=jnp.float32) + bc3_ref[...]          # (gb*C, 10)

    for g in range(gb):
        out_ref[g] = z[g * C:(g + 1) * C, :]                                # (C, 10)


def _default_graphs_per_step(batch):
    # v7x has 2 TensorCores per chip: keep one graph per grid step so the "parallel"
    # grid axis feeds both cores.  Single-TC chips (v5e/v6e): fold all graphs into
    # one step (the grid is just a serial loop there; folding interleaves the two
    # dependency chains and pays the per-step pipeline overhead once).
    try:
        kind = jax.devices()[0].device_kind.lower()
    except Exception:
        kind = ""
    return 1 if "7" in kind else batch


def prepare_kernel_params(master):
    """Torch-layout master params -> fused / transposed bf16 MXU weights + f32 biases."""
    (Wl1, Wr1, b1, Wl2, Wr2, b2, Wc1, bc1, Wc2, bc2, Wc3, bc3) = master
    return (
        jnp.concatenate([Wl1, Wr1], axis=0).T.astype(jnp.bfloat16),   # (H, 2F)
        b1.reshape(-1, 1).astype(jnp.float32),                        # (H, 1)
        jnp.concatenate([Wl2, Wr2], axis=0).T.astype(jnp.bfloat16),   # (C, 2H)
        b2.reshape(-1, 1).astype(jnp.float32),                        # (C, 1)
        Wc1.T.astype(jnp.bfloat16), bc1.reshape(1, -1).astype(jnp.float32),   # (200,100),(1,100)
        Wc2.T.astype(jnp.bfloat16), bc2.reshape(1, -1).astype(jnp.float32),   # (100, 50),(1, 50)
        Wc3.T.astype(jnp.bfloat16), bc3.reshape(1, -1).astype(jnp.float32),   # (50,  10),(1, 10)
    )


def siamese_geosage_forward(a_norm, x, kparams, graphs_per_step=None):
    """a_norm: (B,N,N) f32 row-normalized adjacency; x: (B,N,F) f32.
    Returns (B, nclass, 10) f32 — row b is classifier(forward_single(graph_b).T)."""
    B, N, F = x.shape
    W1T, b1c, W2T, b2c, Wc1T, bc1r, Wc2T, bc2r, Wc3T, bc3r = kparams
    H = W1T.shape[0]
    C = W2T.shape[0]
    H1 = Wc1T.shape[1]
    H2 = Wc2T.shape[1]
    O = Wc3T.shape[1]

    if graphs_per_step is None:
        graphs_per_step = _default_graphs_per_step(B)
    gb = graphs_per_step
    assert B % gb == 0

    # layout plumbing in the wrapper: feed A^T and x^T so the kernel is transpose-free
    at = jnp.swapaxes(a_norm, 1, 2).astype(jnp.bfloat16)   # (B, N, N)
    xt = jnp.swapaxes(x, 1, 2).astype(jnp.bfloat16)        # (B, F, N)

    kernel = functools.partial(siamese_sage_kernel, gb=gb)

    out = pl.pallas_call(
        kernel,
        out_shape=jax.ShapeDtypeStruct((B, C, O), jnp.float32),
        grid=(B // gb,),
        in_specs=[
            pl.BlockSpec((gb, N, N), lambda b: (b, 0, 0)),     # A^T (per-step graphs)
            pl.BlockSpec((gb, F, N), lambda b: (b, 0, 0)),     # x^T
            pl.BlockSpec((H, 2 * F), lambda b: (0, 0)),        # [Wl1;Wr1]^T
            pl.BlockSpec((H, 1), lambda b: (0, 0)),            # b1 (column)
            pl.BlockSpec((C, 2 * H), lambda b: (0, 0)),        # [Wl2;Wr2]^T
            pl.BlockSpec((C, 1), lambda b: (0, 0)),            # b2 (column)
            pl.BlockSpec((N, H1), lambda b: (0, 0)),           # Wc1^T
            pl.BlockSpec((1, H1), lambda b: (0, 0)),           # bc1 (row)
            pl.BlockSpec((H1, H2), lambda b: (0, 0)),          # Wc2^T
            pl.BlockSpec((1, H2), lambda b: (0, 0)),           # bc2 (row)
            pl.BlockSpec((H2, O), lambda b: (0, 0)),           # Wc3^T
            pl.BlockSpec((1, O), lambda b: (0, 0)),            # bc3 (row)
        ],
        out_specs=pl.BlockSpec((gb, C, O), lambda b: (b, 0, 0)),
        compiler_params=pltpu.CompilerParams(
            dimension_semantics=("parallel",)),                # feeds 2nd TC on v7x
    )(at, xt, W1T, b1c, W2T, b2c, Wc1T, bc1r, Wc2T, bc2r, Wc3T, bc3r)

    return out   # torch-native (B, nclass, 10); no wrapper transpose needed


# ---------------- pure-JAX f32 reference (unfused, torch orientation) ----------------
def ref_forward(a_norm, x, master):
    (Wl1, Wr1, b1, Wl2, Wr2, b2, Wc1, bc1, Wc2, bc2, Wc3, bc3) = master

    def single(A, xg):
        h = jax.nn.relu(A @ xg @ Wl1 + xg @ Wr1 + b1)
        y = A @ h @ Wl2 + h @ Wr2 + b2
        z = y.T                                   # (C, N)
        z = jax.nn.relu(z @ Wc1.T + bc1)
        z = jax.nn.relu(z @ Wc2.T + bc2)
        return z @ Wc3.T + bc3                    # (C, 10)

    return jax.vmap(single)(a_norm, x)            # (B, C, 10)


if __name__ == "__main__":
    key = jax.random.PRNGKey(0)
    ks = jax.random.split(key, 16)

    # ---- synthetic graph data: dense symmetric weighted adjacency, zero diagonal ----
    # TODO(synk): PyG's sparse edge_index/edge_attr scatter-mean aggregation is replaced
    # by a host-built dense row-normalized adjacency (D^{-1} A == weighted mean).
    A = jax.random.uniform(ks[0], (BATCH, N_NODES, N_NODES), dtype=jnp.float32)
    A = 0.5 * (A + jnp.swapaxes(A, 1, 2))
    A = jnp.where(A > 0.85, A, 0.0)
    A = A * (1.0 - jnp.eye(N_NODES, dtype=jnp.float32))
    deg = A.sum(axis=-1)
    dinv = jnp.where(deg > 0, 1.0 / deg, 0.0)
    a_norm = dinv[:, :, None] * A                         # (B, N, N)

    x = jax.random.normal(ks[1], (BATCH, N_NODES, NFEAT), dtype=jnp.float32)

    # ---- deterministic f32 master parameters (shapes from the module's __init__) ----
    Wl1 = 0.1 * jax.random.normal(ks[2], (NFEAT, NHID), dtype=jnp.float32)
    Wr1 = 0.1 * jax.random.normal(ks[3], (NFEAT, NHID), dtype=jnp.float32)
    b1  = 0.1 * jax.random.normal(ks[4], (NHID,), dtype=jnp.float32)
    Wl2 = 0.1 * jax.random.normal(ks[5], (NHID, NCLASS), dtype=jnp.float32)
    Wr2 = 0.1 * jax.random.normal(ks[6], (NHID, NCLASS), dtype=jnp.float32)
    b2  = 0.1 * jax.random.normal(ks[7], (NCLASS,), dtype=jnp.float32)
    Wc1 = 0.1 * jax.random.normal(ks[8], (H_CLS1, N_NODES), dtype=jnp.float32)  # Linear(200,100).weight
    bc1 = 0.1 * jax.random.normal(ks[9], (H_CLS1,), dtype=jnp.float32)
    Wc2 = 0.1 * jax.random.normal(ks[10], (H_CLS2, H_CLS1), dtype=jnp.float32)  # Linear(100,50).weight
    bc2 = 0.1 * jax.random.normal(ks[11], (H_CLS2,), dtype=jnp.float32)
    Wc3 = 0.1 * jax.random.normal(ks[12], (N_OUT, H_CLS2), dtype=jnp.float32)   # Linear(50,10).weight
    bc3 = 0.1 * jax.random.normal(ks[13], (N_OUT,), dtype=jnp.float32)
    master = (Wl1, Wr1, b1, Wl2, Wr2, b2, Wc1, bc1, Wc2, bc2, Wc3, bc3)

    kparams = prepare_kernel_params(master)

    out = siamese_geosage_forward(a_norm, x, kparams)
    out = jax.block_until_ready(out)
    out1, out2 = out[0], out[1]     # matches forward(data1, data2) -> (out1, out2)

    ref = jax.block_until_ready(ref_forward(a_norm, x, master))

    assert out1.shape == (NCLASS, N_OUT), out1.shape
    assert out2.shape == (NCLASS, N_OUT), out2.shape
    assert np.all(np.isfinite(np.asarray(out)))
    np.testing.assert_allclose(np.asarray(out), np.asarray(ref), rtol=2e-2, atol=2e-2)

    # TODO(synk): F.dropout and the classifier nn.Dropout layers are identity here
    # (inference mode); training-mode dropout is not implemented.
    print("KERNEL_OK")
</pallas_src>

<mosaic_0001>
module attributes {stable_mosaic.version = 11 : i64} {
  func.func @siamese_sage_kernel(%arg0: i32, %arg1: memref<2x200x200xbf16, #tpu.memory_space<vmem>>, %arg2: memref<2x16x200xbf16, #tpu.memory_space<vmem>>, %arg3: memref<32x32xbf16, #tpu.memory_space<vmem>>, %arg4: memref<32x1xf32, #tpu.memory_space<vmem>>, %arg5: memref<8x64xbf16, #tpu.memory_space<vmem>>, %arg6: memref<8x1xf32, #tpu.memory_space<vmem>>, %arg7: memref<200x100xbf16, #tpu.memory_space<vmem>>, %arg8: memref<1x100xf32, #tpu.memory_space<vmem>>, %arg9: memref<100x50xbf16, #tpu.memory_space<vmem>>, %arg10: memref<1x50xf32, #tpu.memory_space<vmem>>, %arg11: memref<50x10xbf16, #tpu.memory_space<vmem>>, %arg12: memref<1x10xf32, #tpu.memory_space<vmem>>, %arg13: memref<2x8x10xf32, #tpu.memory_space<vmem>>) attributes {dimension_semantics = [#tpu.dimension_semantics<parallel>], iteration_bounds = array<i64: 1>, scalar_prefetch = 0 : i64, scratch_operands = 0 : i64, tpu.core_type = #tpu.core_type<tc>, window_params = [{transform_indices = @transform_0, window_bounds = array<i64: 2, 200, 200>}, {transform_indices = @transform_1, window_bounds = array<i64: 2, 16, 200>}, {pipeline_mode = #tpu.pipeline_mode<synchronous>, transform_indices = @transform_2, window_bounds = array<i64: 32, 32>}, {pipeline_mode = #tpu.pipeline_mode<synchronous>, transform_indices = @transform_3, window_bounds = array<i64: 32, 1>}, {pipeline_mode = #tpu.pipeline_mode<synchronous>, transform_indices = @transform_4, window_bounds = array<i64: 8, 64>}, {pipeline_mode = #tpu.pipeline_mode<synchronous>, transform_indices = @transform_5, window_bounds = array<i64: 8, 1>}, {pipeline_mode = #tpu.pipeline_mode<synchronous>, transform_indices = @transform_6, window_bounds = array<i64: 200, 100>}, {pipeline_mode = #tpu.pipeline_mode<synchronous>, transform_indices = @transform_7, window_bounds = array<i64: 1, 100>}, {pipeline_mode = #tpu.pipeline_mode<synchronous>, transform_indices = @transform_8, window_bounds = array<i64: 100, 50>}, {pipeline_mode = #tpu.pipeline_mode<synchronous>, transform_indices = @transform_9, window_bounds = array<i64: 1, 50>}, {pipeline_mode = #tpu.pipeline_mode<synchronous>, transform_indices = @transform_10, window_bounds = array<i64: 50, 10>}, {pipeline_mode = #tpu.pipeline_mode<synchronous>, transform_indices = @transform_11, window_bounds = array<i64: 1, 10>}, {transform_indices = @transform_12, window_bounds = array<i64: 2, 8, 10>}]} {
    %c0 = arith.constant 0 : index
    %c0_0 = arith.constant 0 : index
    %c0_1 = arith.constant 0 : index
    %0 = vector.load %arg1[%c0, %c0_0, %c0_1] : memref<2x200x200xbf16, #tpu.memory_space<vmem>>, vector<1x200x200xbf16>
    %1 = vector.shape_cast %0 : vector<1x200x200xbf16> to vector<200x200xbf16>
    %c0_2 = arith.constant 0 : index
    %c0_3 = arith.constant 0 : index
    %c0_4 = arith.constant 0 : index
    %2 = vector.load %arg2[%c0_2, %c0_3, %c0_4] : memref<2x16x200xbf16, #tpu.memory_space<vmem>>, vector<1x16x200xbf16>
    %3 = vector.shape_cast %2 : vector<1x16x200xbf16> to vector<16x200xbf16>
    %cst = arith.constant dense<0.000000e+00> : vector<16x200xf32>
    %4 = tpu.matmul %3, %1, %cst {dimension_numbers = #tpu.dot_dimension_numbers<[1], [0], [0], [1], [0, 0, 1, 1], [], []>} : vector<16x200xbf16>, vector<200x200xbf16>, vector<16x200xf32> -> vector<16x200xf32>
    %5 = arith.truncf %4 : vector<16x200xf32> to vector<16x200xbf16>
    %6 = tpu.concatenate %5, %3 in 0 : vector<16x200xbf16>, vector<16x200xbf16> -> vector<32x200xbf16>
    %c0_5 = arith.constant 0 : index
    %c0_6 = arith.constant 0 : index
    %7 = vector.load %arg3[%c0_5, %c0_6] : memref<32x32xbf16, #tpu.memory_space<vmem>>, vector<32x32xbf16>
    %cst_7 = arith.constant dense<0.000000e+00> : vector<32x200xf32>
    %8 = tpu.matmul %7, %6, %cst_7 {dimension_numbers = #tpu.dot_dimension_numbers<[1], [0], [0], [1], [0, 0, 1, 1], [], []>} : vector<32x32xbf16>, vector<32x200xbf16>, vector<32x200xf32> -> vector<32x200xf32>
    %c0_8 = arith.constant 0 : index
    %c0_9 = arith.constant 0 : index
    %9 = vector.load %arg4[%c0_8, %c0_9] : memref<32x1xf32, #tpu.memory_space<vmem>>, vector<32x1xf32>
    %10 = vector.broadcast %9 : vector<32x1xf32> to vector<32x200xf32>
    %11 = arith.addf %8, %10 : vector<32x200xf32>
    %cst_10 = arith.constant 0.000000e+00 : f32
    %12 = vector.broadcast %cst_10 : f32 to vector<32x200xf32>
    %13 = arith.maximumf %11, %12 : vector<32x200xf32>
    %14 = arith.truncf %13 : vector<32x200xf32> to vector<32x200xbf16>
    %cst_11 = arith.constant dense<0.000000e+00> : vector<32x200xf32>
    %15 = tpu.matmul %14, %1, %cst_11 {dimension_numbers = #tpu.dot_dimension_numbers<[1], [0], [0], [1], [0, 0, 1, 1], [], []>} : vector<32x200xbf16>, vector<200x200xbf16>, vector<32x200xf32> -> vector<32x200xf32>
    %16 = arith.truncf %15 : vector<32x200xf32> to vector<32x200xbf16>
    %17 = tpu.concatenate %16, %14 in 0 : vector<32x200xbf16>, vector<32x200xbf16> -> vector<64x200xbf16>
    %c0_12 = arith.constant 0 : index
    %c0_13 = arith.constant 0 : index
    %18 = vector.load %arg5[%c0_12, %c0_13] : memref<8x64xbf16, #tpu.memory_space<vmem>>, vector<8x64xbf16>
    %cst_14 = arith.constant dense<0.000000e+00> : vector<8x200xf32>
    %19 = tpu.matmul %18, %17, %cst_14 {dimension_numbers = #tpu.dot_dimension_numbers<[1], [0], [0], [1], [0, 0, 1, 1], [], []>} : vector<8x64xbf16>, vector<64x200xbf16>, vector<8x200xf32> -> vector<8x200xf32>
    %c0_15 = arith.constant 0 : index
    %c0_16 = arith.constant 0 : index
    %20 = vector.load %arg6[%c0_15, %c0_16] : memref<8x1xf32, #tpu.memory_space<vmem>>, vector<8x1xf32>
    %21 = vector.broadcast %20 : vector<8x1xf32> to vector<8x200xf32>
    %22 = arith.addf %19, %21 : vector<8x200xf32>
    %c1 = arith.constant 1 : index
    %c0_17 = arith.constant 0 : index
    %c0_18 = arith.constant 0 : index
    %23 = vector.load %arg1[%c1, %c0_17, %c0_18] : memref<2x200x200xbf16, #tpu.memory_space<vmem>>, vector<1x200x200xbf16>
    %24 = vector.shape_cast %23 : vector<1x200x200xbf16> to vector<200x200xbf16>
    %c1_19 = arith.constant 1 : index
    %c0_20 = arith.constant 0 : index
    %c0_21 = arith.constant 0 : index
    %25 = vector.load %arg2[%c1_19, %c0_20, %c0_21] : memref<2x16x200xbf16, #tpu.memory_space<vmem>>, vector<1x16x200xbf16>
    %26 = vector.shape_cast %25 : vector<1x16x200xbf16> to vector<16x200xbf16>
    %cst_22 = arith.constant dense<0.000000e+00> : vector<16x200xf32>
    %27 = tpu.matmul %26, %24, %cst_22 {dimension_numbers = #tpu.dot_dimension_numbers<[1], [0], [0], [1], [0, 0, 1, 1], [], []>} : vector<16x200xbf16>, vector<200x200xbf16>, vector<16x200xf32> -> vector<16x200xf32>
    %28 = arith.truncf %27 : vector<16x200xf32> to vector<16x200xbf16>
    %29 = tpu.concatenate %28, %26 in 0 : vector<16x200xbf16>, vector<16x200xbf16> -> vector<32x200xbf16>
    %c0_23 = arith.constant 0 : index
    %c0_24 = arith.constant 0 : index
    %30 = vector.load %arg3[%c0_23, %c0_24] : memref<32x32xbf16, #tpu.memory_space<vmem>>, vector<32x32xbf16>
    %cst_25 = arith.constant dense<0.000000e+00> : vector<32x200xf32>
    %31 = tpu.matmul %30, %29, %cst_25 {dimension_numbers = #tpu.dot_dimension_numbers<[1], [0], [0], [1], [0, 0, 1, 1], [], []>} : vector<32x32xbf16>, vector<32x200xbf16>, vector<32x200xf32> -> vector<32x200xf32>
    %c0_26 = arith.constant 0 : index
    %c0_27 = arith.constant 0 : index
    %32 = vector.load %arg4[%c0_26, %c0_27] : memref<32x1xf32, #tpu.memory_space<vmem>>, vector<32x1xf32>
    %33 = vector.broadcast %32 : vector<32x1xf32> to vector<32x200xf32>
    %34 = arith.addf %31, %33 : vector<32x200xf32>
    %cst_28 = arith.constant 0.000000e+00 : f32
    %35 = vector.broadcast %cst_28 : f32 to vector<32x200xf32>
    %36 = arith.maximumf %34, %35 : vector<32x200xf32>
    %37 = arith.truncf %36 : vector<32x200xf32> to vector<32x200xbf16>
    %cst_29 = arith.constant dense<0.000000e+00> : vector<32x200xf32>
    %38 = tpu.matmul %37, %24, %cst_29 {dimension_numbers = #tpu.dot_dimension_numbers<[1], [0], [0], [1], [0, 0, 1, 1], [], []>} : vector<32x200xbf16>, vector<200x200xbf16>, vector<32x200xf32> -> vector<32x200xf32>
    %39 = arith.truncf %38 : vector<32x200xf32> to vector<32x200xbf16>
    %40 = tpu.concatenate %39, %37 in 0 : vector<32x200xbf16>, vector<32x200xbf16> -> vector<64x200xbf16>
    %c0_30 = arith.constant 0 : index
    %c0_31 = arith.constant 0 : index
    %41 = vector.load %arg5[%c0_30, %c0_31] : memref<8x64xbf16, #tpu.memory_space<vmem>>, vector<8x64xbf16>
    %cst_32 = arith.constant dense<0.000000e+00> : vector<8x200xf32>
    %42 = tpu.matmul %41, %40, %cst_32 {dimension_numbers = #tpu.dot_dimension_numbers<[1], [0], [0], [1], [0, 0, 1, 1], [], []>} : vector<8x64xbf16>, vector<64x200xbf16>, vector<8x200xf32> -> vector<8x200xf32>
    %c0_33 = arith.constant 0 : index
    %c0_34 = arith.constant 0 : index
    %43 = vector.load %arg6[%c0_33, %c0_34] : memref<8x1xf32, #tpu.memory_space<vmem>>, vector<8x1xf32>
    %44 = vector.broadcast %43 : vector<8x1xf32> to vector<8x200xf32>
    %45 = arith.addf %42, %44 : vector<8x200xf32>
    %46 = tpu.concatenate %22, %45 in 0 : vector<8x200xf32>, vector<8x200xf32> -> vector<16x200xf32>
    %47 = arith.truncf %46 : vector<16x200xf32> to vector<16x200xbf16>
    %c0_35 = arith.constant 0 : index
    %c0_36 = arith.constant 0 : index
    %48 = vector.load %arg7[%c0_35, %c0_36] : memref<200x100xbf16, #tpu.memory_space<vmem>>, vector<200x100xbf16>
    %cst_37 = arith.constant dense<0.000000e+00> : vector<16x100xf32>
    %49 = tpu.matmul %47, %48, %cst_37 {dimension_numbers = #tpu.dot_dimension_numbers<[1], [0], [0], [1], [0, 0, 1, 1], [], []>} : vector<16x200xbf16>, vector<200x100xbf16>, vector<16x100xf32> -> vector<16x100xf32>
    %c0_38 = arith.constant 0 : index
    %c0_39 = arith.constant 0 : index
    %50 = vector.load %arg8[%c0_38, %c0_39] : memref<1x100xf32, #tpu.memory_space<vmem>>, vector<1x100xf32>
    %51 = vector.broadcast %50 : vector<1x100xf32> to vector<16x100xf32>
    %52 = arith.addf %49, %51 : vector<16x100xf32>
    %cst_40 = arith.constant 0.000000e+00 : f32
    %53 = vector.broadcast %cst_40 : f32 to vector<16x100xf32>
    %54 = arith.maximumf %52, %53 : vector<16x100xf32>
    %55 = arith.truncf %54 : vector<16x100xf32> to vector<16x100xbf16>
    %c0_41 = arith.constant 0 : index
    %c0_42 = arith.constant 0 : index
    %56 = vector.load %arg9[%c0_41, %c0_42] : memref<100x50xbf16, #tpu.memory_space<vmem>>, vector<100x50xbf16>
    %cst_43 = arith.constant dense<0.000000e+00> : vector<16x50xf32>
    %57 = tpu.matmul %55, %56, %cst_43 {dimension_numbers = #tpu.dot_dimension_numbers<[1], [0], [0], [1], [0, 0, 1, 1], [], []>} : vector<16x100xbf16>, vector<100x50xbf16>, vector<16x50xf32> -> vector<16x50xf32>
    %c0_44 = arith.constant 0 : index
    %c0_45 = arith.constant 0 : index
    %58 = vector.load %arg10[%c0_44, %c0_45] : memref<1x50xf32, #tpu.memory_space<vmem>>, vector<1x50xf32>
    %59 = vector.broadcast %58 : vector<1x50xf32> to vector<16x50xf32>
    %60 = arith.addf %57, %59 : vector<16x50xf32>
    %cst_46 = arith.constant 0.000000e+00 : f32
    %61 = vector.broadcast %cst_46 : f32 to vector<16x50xf32>
    %62 = arith.maximumf %60, %61 : vector<16x50xf32>
    %63 = arith.truncf %62 : vector<16x50xf32> to vector<16x50xbf16>
    %c0_47 = arith.constant 0 : index
    %c0_48 = arith.constant 0 : index
    %64 = vector.load %arg11[%c0_47, %c0_48] : memref<50x10xbf16, #tpu.memory_space<vmem>>, vector<50x10xbf16>
    %cst_49 = arith.constant dense<0.000000e+00> : vector<16x10xf32>
    %65 = tpu.matmul %63, %64, %cst_49 {dimension_numbers = #tpu.dot_dimension_numbers<[1], [0], [0], [1], [0, 0, 1, 1], [], []>} : vector<16x50xbf16>, vector<50x10xbf16>, vector<16x10xf32> -> vector<16x10xf32>
    %c0_50 = arith.constant 0 : index
    %c0_51 = arith.constant 0 : index
    %66 = vector.load %arg12[%c0_50, %c0_51] : memref<1x10xf32, #tpu.memory_space<vmem>>, vector<1x10xf32>
    %67 = vector.broadcast %66 : vector<1x10xf32> to vector<16x10xf32>
    %68 = arith.addf %65, %67 : vector<16x10xf32>
    %69 = vector.extract_strided_slice %68 {offsets = [0, 0], sizes = [8, 10], strides = [1, 1]} : vector<16x10xf32> to vector<8x10xf32>
    %c0_52 = arith.constant 0 : index
    %c0_53 = arith.constant 0 : index
    %c0_54 = arith.constant 0 : index
    %70 = vector.load %arg13[%c0_52, %c0_53, %c0_54] : memref<2x8x10xf32, #tpu.memory_space<vmem>>, vector<1x8x10xf32>
    %71 = vector.shape_cast %70 : vector<1x8x10xf32> to vector<8x10xf32>
    %72 = vector.shape_cast %69 : vector<8x10xf32> to vector<1x8x10xf32>
    tpu.vector_store %arg13[%c0_52, %c0_53, %c0_54], %72 {strides = array<i32>} : memref<2x8x10xf32, #tpu.memory_space<vmem>>, vector<1x8x10xf32>,
    %73 = vector.extract_strided_slice %68 {offsets = [8, 0], sizes = [8, 10], strides = [1, 1]} : vector<16x10xf32> to vector<8x10xf32>
    %c1_55 = arith.constant 1 : index
    %c0_56 = arith.constant 0 : index
    %c0_57 = arith.constant 0 : index
    %74 = vector.load %arg13[%c1_55, %c0_56, %c0_57] : memref<2x8x10xf32, #tpu.memory_space<vmem>>, vector<1x8x10xf32>
    %75 = vector.shape_cast %74 : vector<1x8x10xf32> to vector<8x10xf32>
    %76 = vector.shape_cast %73 : vector<8x10xf32> to vector<1x8x10xf32>
    tpu.vector_store %arg13[%c1_55, %c0_56, %c0_57], %76 {strides = array<i32>} : memref<2x8x10xf32, #tpu.memory_space<vmem>>, vector<1x8x10xf32>,
    return
  }
  func.func @transform_0(%arg0: i32) -> (i32, i32, i32) {
    %c0_i32 = arith.constant 0 : i32
    %c0_i32_0 = arith.constant 0 : i32
    %c0_i32_1 = arith.constant 0 : i32
    return %arg0, %c0_i32, %c0_i32_0 : i32, i32, i32
  }
  func.func @transform_1(%arg0: i32) -> (i32, i32, i32) {
    %c0_i32 = arith.constant 0 : i32
    %c0_i32_0 = arith.constant 0 : i32
    %c0_i32_1 = arith.constant 0 : i32
    return %arg0, %c0_i32, %c0_i32_0 : i32, i32, i32
  }
  func.func @transform_2(%arg0: i32) -> (i32, i32) {
    %c0_i32 = arith.constant 0 : i32
    %c0_i32_0 = arith.constant 0 : i32
    %c0_i32_1 = arith.constant 0 : i32
    return %c0_i32, %c0_i32_0 : i32, i32
  }
  func.func @transform_3(%arg0: i32) -> (i32, i32) {
    %c0_i32 = arith.constant 0 : i32
    %c0_i32_0 = arith.constant 0 : i32
    %c0_i32_1 = arith.constant 0 : i32
    return %c0_i32, %c0_i32_0 : i32, i32
  }
  func.func @transform_4(%arg0: i32) -> (i32, i32) {
    %c0_i32 = arith.constant 0 : i32
    %c0_i32_0 = arith.constant 0 : i32
    %c0_i32_1 = arith.constant 0 : i32
    return %c0_i32, %c0_i32_0 : i32, i32
  }
  func.func @transform_5(%arg0: i32) -> (i32, i32) {
    %c0_i32 = arith.constant 0 : i32
    %c0_i32_0 = arith.constant 0 : i32
    %c0_i32_1 = arith.constant 0 : i32
    return %c0_i32, %c0_i32_0 : i32, i32
  }
  func.func @transform_6(%arg0: i32) -> (i32, i32) {
    %c0_i32 = arith.constant 0 : i32
    %c0_i32_0 = arith.constant 0 : i32
    %c0_i32_1 = arith.constant 0 : i32
    return %c0_i32, %c0_i32_0 : i32, i32
  }
  func.func @transform_7(%arg0: i32) -> (i32, i32) {
    %c0_i32 = arith.constant 0 : i32
    %c0_i32_0 = arith.constant 0 : i32
    %c0_i32_1 = arith.constant 0 : i32
    return %c0_i32, %c0_i32_0 : i32, i32
  }
  func.func @transform_8(%arg0: i32) -> (i32, i32) {
    %c0_i32 = arith.constant 0 : i32
    %c0_i32_0 = arith.constant 0 : i32
    %c0_i32_1 = arith.constant 0 : i32
    return %c0_i32, %c0_i32_0 : i32, i32
  }
  func.func @transform_9(%arg0: i32) -> (i32, i32) {
    %c0_i32 = arith.constant 0 : i32
    %c0_i32_0 = arith.constant 0 : i32
    %c0_i32_1 = arith.constant 0 : i32
    return %c0_i32, %c0_i32_0 : i32, i32
  }
  func.func @transform_10(%arg0: i32) -> (i32, i32) {
    %c0_i32 = arith.constant 0 : i32
    %c0_i32_0 = arith.constant 0 : i32
    %c0_i32_1 = arith.constant 0 : i32
    return %c0_i32, %c0_i32_0 : i32, i32
  }
  func.func @transform_11(%arg0: i32) -> (i32, i32) {
    %c0_i32 = arith.constant 0 : i32
    %c0_i32_0 = arith.constant 0 : i32
    %c0_i32_1 = arith.constant 0 : i32
    return %c0_i32, %c0_i32_0 : i32, i32
  }
  func.func @transform_12(%arg0: i32) -> (i32, i32, i32) {
    %c0_i32 = arith.constant 0 : i32
    %c0_i32_0 = arith.constant 0 : i32
    %c0_i32_1 = arith.constant 0 : i32
    return %arg0, %c0_i32, %c0_i32_0 : i32, i32, i32
  }
}

</mosaic_0001>

<bundles_post_ra>
// kernel: tpu_custom_call.1
= control target key start
LH: loop header
LB: loop body
LE: loop exit
PB: predicated region body
PF: predicated region fallthrough
CT: control target
= control target key end

     0   :  { %17 = vsyncpa [#allocation3], 0  ;;  %s2123_s0 = inlined_call_operand.hbm [shape: bf16[2,200,200], index: 0, kind: input, shape index: {}]   ;;  %s2124_s1 = inlined_call_operand.vmem [shape: bf16[2,16,200], index: 1, kind: input, shape index: {}]   ;;  %s2125_s2 = inlined_call_operand.hbm [shape: bf16[32,32], index: 2, kind: input, shape index: {}]   ;;  %s2126_s3 = inlined_call_operand.vmem [shape: f32[32,1], index: 3, kind: input, shape index: {}]   ;;  %s2127_s4 = inlined_call_operand.vmem [shape: bf16[8,64], index: 4, kind: input, shape index: {}]   ;;  %s2128_s5 = inlined_call_operand.vmem [shape: f32[8,1], index: 5, kind: input, shape index: {}]   ;;  %s2129_s6 = inlined_call_operand.vmem [shape: bf16[200,100], index: 6, kind: input, shape index: {}]   ;;  %s2130_s7 = inlined_call_operand.hbm [shape: f32[1,100], index: 7, kind: input, shape index: {}]   ;;  %s2131_s8 = inlined_call_operand.vmem [shape: bf16[100,50], index: 8, kind: input, shape index: {}]   ;;  %s2132_s9 = inlined_call_operand.vmem [shape: f32[1,50], index: 9, kind: input, shape index: {}]   ;;  %s2133_s10 = inlined_call_operand.vmem [shape: bf16[50,10], index: 10, kind: input, shape index: {}]   ;;  %s2134_s11 = inlined_call_operand.vmem [shape: f32[1,10], index: 11, kind: input, shape index: {}]   ;;  %s2135_s12 = inlined_call_operand.hbm [shape: f32[2,8,10], index: 12, kind: output, shape index: {}]  }
   0x1   :  { %18 = vsyncpa [#allocation6], 0 }
   0x2   :  { %19 = vsyncpa [#allocation4], 0  ;;  %s1644_s21 = smov [#allocation5]  }
   0x3   :  { %s39_s22 = sshll.u32 %s1644_s21, 4  ;;  %s40_s22 = int_to_ptr.vmem [resolvable:$true] %s39_s22 }
   0x4   :  { %s1566_s23 = scalar_lea.vmem %s40_s22, 256  ;;  %p1571_p1 = scmp.lt.s32.totalorder %s40_s22, %s40_s22 }
   0x5   :  { %p1567_p0 = scmp.ne.s32.totalorder %s40_s22, %s1566_s23  ;;  %p1572_p2 = scmp.lt.s32.totalorder %s1566_s23, %s1566_s23 }
   0x7   :  { %p1573_p3 = por %p1572_p2, %p1571_p1 }
   0x9   :  { %p1574_p4 = pnand %p1573_p3, %p1567_p0 }
   0xb   :  { %1577 = shalt.err (!%p1574_p4)
}
   0xc   :  { %s1645_s24 = smov 64   ;;  %s1646_s25 = smov 4  }
   0xd   :  { %45 = dma.hbm_to_vmem [thread:$0]  %s2125_s2, 256, %s40_s22, [#allocation6], %s1645_s24, %s1645_s24, %s1646_s25  }
   0xe   :  { %s1647_s28 = smov [#allocation2]  }
   0xf   :  { %s25_s29 = sshll.u32 %s1647_s28, 4  ;;  %s26_s29 = int_to_ptr.vmem [resolvable:$true] %s25_s29 }
  0x10   :  { %s1586_s30 = scalar_lea.vmem %s26_s29, 6400  ;;  %p1591_p6 = scmp.lt.s32.totalorder %s26_s29, %s26_s29 }
  0x11   :  { %p1587_p5 = scmp.ne.s32.totalorder %s26_s29, %s1586_s30  ;;  %p1592_p7 = scmp.lt.s32.totalorder %s1586_s30, %s1586_s30 }
  0x13   :  { %p1593_p8 = por %p1592_p7, %p1591_p6 }
  0x15   :  { %p1594_p9 = pnand %p1593_p8, %p1587_p5 }
  0x17   :  { %1597 = shalt.err (!%p1594_p9)
}
  0x18   :  { %s1648_s13 = smov 128   ;;  %s1649_s14 = smov 8  }
  0x19   :  { %31 = dma.hbm_to_vmem [thread:$0]  %s2123_s0, 6400, %s26_s29, [#allocation3], %s1648_s13, %s1648_s13, %s1649_s14  }
  0x1a   :  { %s1650_s2 = smov [#allocation7]  }
  0x1b   :  { %s60_s17 = sshll.u32 %s1650_s2, 4  ;;  %s61_s17 = int_to_ptr.vmem [resolvable:$true] %s60_s17 }
  0x1c   :  { %s1606_s18 = scalar_lea.vmem %s61_s17, 16  ;;  %s1610_s19 = scalar_lea.vmem %s61_s17, 32 }
  0x1d   :  { %p1607_p10 = scmp.ne.s32.totalorder %s61_s17, %s1606_s18  ;;  %p1611_p11 = scmp.lt.s32.totalorder %s61_s17, %s61_s17 }
  0x1e   :  { %p1612_p12 = scmp.lt.s32.totalorder %s1610_s19, %s1606_s18 }
  0x20   :  { %p1613_p13 = por %p1612_p12, %p1611_p11 }
  0x22   :  { %p1614_p0 = pnand %p1613_p13, %p1607_p10 }
  0x24   :  { %1617 = shalt.err (!%p1614_p0)
}
  0x25   :  { %63 = dma.hbm_to_vmem [thread:$0]  %s2130_s7, 16, %s61_s17, [#allocation6]  }
  0x26   :  { %1638 = dma.done.wait [#allocation3], 6400  }
  0x27   :  { %1639 = vsyncadd [#allocation3], 4294960896 }
  0x28   :  { %1640 = dma.done.wait [#allocation6], 272  }
  0x29   :  { %1641 = vsyncadd [#allocation6], 4294967024  ;;  %v1732_v0 = vld [vmem:[#allocation2 + $0x74] ss:$8 sps:$4 sm:$0xff]   ;;  %v1734_v1 = vld [vmem:[#allocation2 + $0x70] ss:$8 sps:$4 sm:$0xff]  }
  0x2a   :  { %254 = vmatprep.subr.bf16.mxu0 %v1732_v0  ;;  %v1737_v2 = vld [vmem:[#allocation2 + $0x64] ss:$8 sps:$4 sm:$0xff]   ;;  %v1740_v3 = vld [vmem:[#allocation2 + $0x60] ss:$8 sps:$4 sm:$0xff]   ;;  %v1743_v4 = vld [vmem:[#allocation2 + $0x54] ss:$8 sps:$4 sm:$0xff]  }
  0x2b   :  { %255 = vmatpush1.bf16.msra.mxu0 %v1734_v1  ;;  %v1746_v5 = vld [vmem:[#allocation2 + $0x50] ss:$8 sps:$4 sm:$0xff]   ;;  %v1749_v6 = vld [vmem:[#allocation2 + $0x44] ss:$8 sps:$4 sm:$0xff]   ;;  %v1752_v7 = vld [vmem:[#allocation2 + $0x40] ss:$8 sps:$4 sm:$0xff]  }
  0x2c   :  { %256 = vmatprep.subr.bf16.mxu0 %v1737_v2  ;;  %v1755_v8 = vld [vmem:[#allocation2 + $0x34] ss:$8 sps:$4 sm:$0xff]   ;;  %v1758_v9 = vld [vmem:[#allocation2 + $0x30] ss:$8 sps:$4 sm:$0xff]   ;;  %v1761_v10 = vld [vmem:[#allocation2 + $0x24] ss:$8 sps:$4 sm:$0xff]  }
  0x2d   :  { %vm243_vm0 = vcmask 588800   ;;  %v1763_v11 = vld [vmem:[#allocation2 + $0x20] ss:$8 sps:$4 sm:$0xff]   ;;  %v1490_v13 = vld [vmem:[%s2124_s1 + $0x4] ss:$8 sps:$4 sm:$0xff]   ;;  %vm247_vm1 = vcmask 1043456  }
  0x2e   :  { %v1488_v12 = vld [vmem:[%s2124_s1] ss:$8 sps:$4 sm:$0xff]   ;;  %v1771_v14 = vld [vmem:[#allocation2 + $0x14] ss:$8 sps:$4 sm:$0xff]   ;;  %1317 = vmatprep.mubr.msk.bf16.mxu0 %vm243_vm0, %v1490_v13  ;;  %357 = vmatprep.subr.bf16.mxu1 %v1490_v13  ;;  %v1776_v16 = vld [vmem:[#allocation2 + $0x10] ss:$8 sps:$4 sm:$0xff]  }
  0x2f   :  { %257 = vmatpush1.bf16.msra.mxu0 %v1740_v3  ;;  %v106_v15 = vld [vmem:[#allocation2 + $0xc0] sm:$0xff]  ;;  %358 = vmatpush1.bf16.msra.mxu1 %v1488_v12  ;;  %v1791_v22 = vld [vmem:[#allocation2 + $0xb4] ss:$8 sps:$4 sm:$0xff]   ;;  %v1796_v23 = vld [vmem:[#allocation2 + $0xb0] ss:$8 sps:$4 sm:$0xff]   ;;  %v1651_v30 = vmov 0  }
  0x30   :  { %258 = vmatprep.subr.bf16.mxu0 %v1743_v4  ;;  %v1778_v17 = vld [vmem:[#allocation2 + $0x4] ss:$8 sps:$4 sm:$0xff]   ;;  %v1314_v18 = vcombine.low %v106_v15, %v106_v15  ;;  %v1782_v19 = vld [vmem:[#allocation2] ss:$8 sps:$4 sm:$0xff]   ;;  %v1789_v21 = vcombine.high %v106_v15, %v106_v15  ;;  %v1482_v26 = vld [vmem:[#allocation2 + $0x94] ss:$8 sps:$4 sm:$0xff]   ;;  %377 = vmatprep.mubr.bf16.mxu1 %v1651_v30 }
  0x31   :  { %v1798_v24 = vld [vmem:[#allocation2 + $0xa4] ss:$8 sps:$4 sm:$0xff]   ;;  %v1481_v25 = vld [vmem:[#allocation2 + $0xa0] ss:$8 sps:$4 sm:$0xff]   ;;  %v1484_v27 = vld [vmem:[#allocation2 + $0x90] ss:$8 sps:$4 sm:$0xff]   ;;  %1448 = vset.pattern.permute.xlu0 %v1651_v30  ;;  %1449 = vset.pattern.permute.xlu1 %v1651_v30 }
  0x32   :  { %v1786_v20 = vsel %vm247_vm1, %v1314_v18, 0  ;;  %v1485_v28 = vld [vmem:[#allocation2 + $0x84] ss:$8 sps:$4 sm:$0xff]   ;;  %v1487_v29 = vld [vmem:[#allocation2 + $0x80] ss:$8 sps:$4 sm:$0xff]   ;;  %v306_v32 = vld [vmem:[%s2126_s3 + $0x10] sm:$0xff] }
  0x33   :  { %259 = vmatpush1.bf16.msra.mxu0 %v1746_v5  ;;  %v304_v31 = vld [vmem:[%s2126_s3] sm:$0xff]  ;;  %v305_v33 = vld [vmem:[%s2126_s3 + $0x8] sm:$0xff]  ;;  %320 = vperm.xlu1 %1449, %v306_v32   ;;  %v307_v34 = vld [vmem:[%s2126_s3 + $0x18] sm:$0xff]  ;;  %vm338_vm2 = vcmask 261120   ;;  %vm480_vm3 = vcmask 523264   ;;  %vm1134_vm4 = vcmask 1041408  }
  0x34   :  { %260 = vmatprep.subr.bf16.mxu0 %v1749_v6  ;;  %310 = vperm.xlu0 %1448, %v304_v31   ;;  %v474_v35 = vld [vmem:[%s2128_s5] sm:$0xff]  ;;  %v1823_v42 = vld [vmem:[#allocation5] sm:$0xff]   ;;  %v1831_v43 = vld [vmem:[#allocation5 + $0x8] sm:$0xff]   ;;  %vm1653_vm5 = vmmov 0   ;;  %vm1221_vm6 = vcmask 1040384   ;;  %vm1130_vm7 = vcmask 818176  }
  0x35   :  { %v1854_v44 = vld [vmem:[#allocation2 + $0x13c] ss:$8 sps:$4 sm:$0xff]   ;;  %v1888_v18 = vld [vmem:[#allocation2 + $0x10c] ss:$8 sps:$4 sm:$0xff]   ;;  %vm1217_vm8 = vcmask 408576   ;;  %vm1266_vm9 = vcmask 80896  }
  0x36   :  { %v1882_v13 = vld [vmem:[#allocation2 + $0x11c] ss:$8 sps:$4 sm:$0xff]  }
  0x37   :  { %261 = vmatpush1.bf16.msra.mxu0 %v1752_v7  ;;  %325 = vperm.xlu1 %1449, %v307_v34   ;;  %v1934_v34 = vld [vmem:[#allocation2 + $0x17c] ss:$8 sps:$4 sm:$0xff]  }
  0x38   :  { %262 = vmatprep.subr.bf16.mxu0 %v1755_v8  ;;  %315 = vperm.xlu0 %1448, %v305_v33  }
  0x3b   :  { %263 = vmatpush1.bf16.msra.mxu0 %v1758_v9 }
  0x3c   :  { %264 = vmatprep.subr.bf16.mxu0 %v1761_v10  ;;  %477 = vperm.xlu0 %1448, %v474_v35   ;;  %v1937_v35 = vld [vmem:[#allocation2 + $0x178] ss:$8 sps:$4 sm:$0xff]  }
  0x3f   :  { %265 = vmatpush1.bf16.msra.mxu0 %v1763_v11 }
  0x40   :  { %266 = vmatprep.subr.bf16.mxu0 %v1771_v14 }
  0x43   :  { %267 = vmatpush1.bf16.msra.mxu0 %v1776_v16 }
  0x44   :  { %268 = vmatprep.subr.bf16.mxu0 %v1778_v17 }
  0x47   :  { %269 = vmatpush1.bf16.msra.mxu0 %v1782_v19 }
  0x48   :  { %1316 = vmatprep.subr.msk.bf16.mxu0 %vm247_vm1, %v1789_v21 }
  0x4b   :  { %277 = vmatpush2.bf16.msra.mxu0 %v1786_v20 }
  0x4c   :  { %278 = vmatprep.subr.bf16.mxu0 %v1791_v22 }
  0x4f   :  { %279 = vmatpush2.bf16.msra.mxu0 %v1796_v23 }
  0x50   :  { %280 = vmatprep.subr.bf16.mxu0 %v1798_v24 }
  0x53   :  { %281 = vmatpush2.bf16.msra.mxu0 %v1481_v25 }
  0x54   :  { %282 = vmatprep.subr.bf16.mxu0 %v1482_v26 }
  0x57   :  { %283 = vmatpush2.bf16.msra.mxu0 %v1484_v27 }
  0x58   :  { %284 = vmatprep.subr.bf16.mxu0 %v1485_v28 }
  0x5b   :  { %285 = vmatpush2.bf16.msra.mxu0 %v1487_v29 }
  0x5e   :  { %287 = vmatmul.mubr.bf16.vlgmr.msra.gmra.mxu0 %v1488_v12  ;;  %v1879_v12 = vld [vmem:[#allocation2 + $0x128] ss:$8 sps:$4 sm:$0xff]  }
  0x5f   :  { %516 = vmatprep.mubr.bf16.mxu0 %v1651_v30 }
  0xae   :  { %v1861_v50 = vpop.permute.xlu1 %320 }
  0xaf   :  { %v1857_v45 = vpop.permute.xlu0 %310 }
  0xb2   :  { %v1868_v63 = vpop.permute.xlu1 %325 }
  0xb3   :  { %v1859_v48 = vpop.permute.xlu0 %315 }
 0x11e   :  { %v288_v36 = vpop.f32.mrf.mxu0 }
 0x120   :  { %v290_v37 = vpop.f32.mrf.mxu0 }
 0x122   :  { %v292_v38 = vpop.f32.mrf.mxu0 }
 0x123   :  { %v297_v41 = vpack.c.bf16 %v292_v38, %v288_v36  ;;  %v1940_v36 = vld [vmem:[#allocation2 + $0x16c] ss:$8 sps:$4 sm:$0xff]   ;;  %v1946_v38 = vld [vmem:[#allocation2 + $0x15c] ss:$8 sps:$4 sm:$0xff]  }
 0x124   :  { %v294_v39 = vpop.f32.mrf.mxu0 }
 0x125   :  { %v298_v40 = vpack.c.bf16 %v294_v39, %v290_v37  ;;  %v1943_v37 = vld [vmem:[#allocation2 + $0x168] ss:$8 sps:$4 sm:$0xff]   ;;  %v1949_v39 = vld [vmem:[#allocation2 + $0x158] ss:$8 sps:$4 sm:$0xff]  }
 0x127   :  { %359 = vmatprep.subr.bf16.mxu1 %v298_v40  ;;  %v1952_v40 = vld [vmem:[#allocation2 + $0x14c] ss:$8 sps:$4 sm:$0xff]  }
 0x128   :  { %360 = vmatpush1.bf16.msra.mxu1 %v297_v41  ;;  %v1955_v41 = vld [vmem:[#allocation2 + $0x148] ss:$8 sps:$4 sm:$0xff]  }
 0x129   :  { %416 = vmatprep.subr.bf16.mxu1 %v1732_v0 }
 0x12b   :  { %1320 = vmatmul.mubr.msk.bf16.vlgmr.msra.gmra.mxu1 %vm338_vm2, %v1823_v42 }
 0x12c   :  { %387 = vmatprep.mubr.bf16.mxu1 %v1651_v30  ;;  %417 = vmatpush1.bf16.msra.mxu1 %v1734_v1 }
 0x12d   :  { %418 = vmatprep.subr.bf16.mxu1 %v1737_v2  ;;  %v1871_v2 = vld [vmem:[#allocation2 + $0x138] ss:$8 sps:$4 sm:$0xff]  }
 0x130   :  { %419 = vmatpush1.bf16.msra.mxu1 %v1740_v3 }
 0x131   :  { %420 = vmatprep.subr.bf16.mxu1 %v1743_v4 }
 0x133   :  { %1321 = vmatmul.mubr.msk.bf16.gmra.mxu1 %vm338_vm2, %v1831_v43 }
 0x134   :  { %421 = vmatpush1.bf16.msra.mxu1 %v1746_v5  ;;  %v1873_v5 = vld [vmem:[#allocation2 + $0x12c] ss:$8 sps:$4 sm:$0xff]  }
 0x135   :  { %422 = vmatprep.subr.bf16.mxu1 %v1749_v6 }
 0x138   :  { %423 = vmatpush1.bf16.msra.mxu1 %v1752_v7 }
 0x139   :  { %424 = vmatprep.subr.bf16.mxu1 %v1755_v8 }
 0x13c   :  { %425 = vmatpush1.bf16.msra.mxu1 %v1758_v9 }
 0x13d   :  { %426 = vmatprep.subr.bf16.mxu1 %v1761_v10 }
 0x140   :  { %427 = vmatpush1.bf16.msra.mxu1 %v1763_v11 }
 0x141   :  { %428 = vmatprep.subr.bf16.mxu1 %v1771_v14 }
 0x144   :  { %429 = vmatpush1.bf16.msra.mxu1 %v1776_v16 }
 0x145   :  { %430 = vmatprep.subr.bf16.mxu1 %v1778_v17  ;;  %v1885_v17 = vld [vmem:[#allocation2 + $0x118] ss:$8 sps:$4 sm:$0xff]  }
 0x148   :  { %431 = vmatpush1.bf16.msra.mxu1 %v1782_v19  ;;  %v1893_v19 = vld [vmem:[%s2124_s1 + $0x14] ss:$8 sps:$4 sm:$0xff]  }
 0x149   :  { %1322 = vmatprep.subr.msk.bf16.mxu1 %vm247_vm1, %v1789_v21  ;;  %v1900_v21 = vld [vmem:[#allocation2 + $0xfc] ss:$8 sps:$4 sm:$0xff]  }
 0x14c   :  { %439 = vmatpush2.bf16.msra.mxu1 %v1786_v20  ;;  %v1897_v20 = vld [vmem:[#allocation2 + $0x108] ss:$8 sps:$4 sm:$0xff]  }
 0x14d   :  { %440 = vmatprep.subr.bf16.mxu1 %v1791_v22  ;;  %v1905_v22 = vld [vmem:[#allocation2 + $0xf8] ss:$8 sps:$4 sm:$0xff]  }
 0x150   :  { %441 = vmatpush2.bf16.msra.mxu1 %v1796_v23  ;;  %v1908_v23 = vld [vmem:[#allocation2 + $0xec] ss:$8 sps:$4 sm:$0xff]  }
 0x151   :  { %442 = vmatprep.subr.bf16.mxu1 %v1798_v24  ;;  %v1911_v24 = vld [vmem:[#allocation2 + $0xe8] ss:$8 sps:$4 sm:$0xff]  }
 0x154   :  { %443 = vmatpush2.bf16.msra.mxu1 %v1481_v25  ;;  %v1914_v25 = vld [vmem:[#allocation2 + $0xdc] ss:$8 sps:$4 sm:$0xff]  }
 0x155   :  { %444 = vmatprep.subr.bf16.mxu1 %v1482_v26  ;;  %v1917_v26 = vld [vmem:[#allocation2 + $0xd8] ss:$8 sps:$4 sm:$0xff]  }
 0x158   :  { %445 = vmatpush2.bf16.msra.mxu1 %v1484_v27  ;;  %v1920_v27 = vld [vmem:[#allocation2 + $0xcc] ss:$8 sps:$4 sm:$0xff]  }
 0x159   :  { %446 = vmatprep.subr.bf16.mxu1 %v1485_v28  ;;  %v550_v28 = vld [vmem:[#allocation2 + $0x188] sm:$0xff] }
 0x15a   :  { %v1926_v31 = vcombine.high %v550_v28, %v550_v28  ;;  %v1354_v32 = vcombine.low %v550_v28, %v550_v28 }
 0x15c   :  { %447 = vmatpush2.bf16.msra.mxu1 %v1487_v29  ;;  %v1923_v29 = vld [vmem:[#allocation2 + $0xc8] ss:$8 sps:$4 sm:$0xff]   ;;  %v1932_v33 = vsel %vm247_vm1, %v1354_v32, 0 }
 0x15d   :  { %697 = vmatprep.subr.bf16.mxu1 %v1854_v44 }
 0x1eb   :  { %v379_v46 = vpop.f32.mrf.mxu1 }
 0x1ec   :  { %v380_v53 = vadd.f32 %v379_v46, %v1857_v45  ;;  %v1531_v46 = vld [vmem:[%s2124_s1 + $0x10] ss:$8 sps:$4 sm:$0xff]  }
 0x1ed   :  { %v381_v47 = vpop.f32.mrf.mxu1 }
 0x1ee   :  { %v382_v51 = vadd.f32 %v381_v47, %v1857_v45  ;;  %v398_v60 = vmax.f32 %v380_v53, 0.0 }
 0x1ef   :  { %v383_v49 = vpop.f32.mrf.mxu1 }
 0x1f0   :  { %v384_v52 = vadd.f32 %v383_v49, %v1859_v48  ;;  %v399_v58 = vmax.f32 %v382_v51, 0.0 }
 0x1f1   :  { %v385_v54 = vpop.f32.mrf.mxu1 }
 0x1f2   :  { %v386_v55 = vadd.f32 %v385_v54, %v1859_v48  ;;  %v400_v56 = vmax.f32 %v384_v52, 0.0 }
 0x1f3   :  { %v389_v57 = vpop.f32.mrf.mxu1 }
 0x1f4   :  { %v401_v59 = vmax.f32 %v386_v55, 0.0  ;;  %v390_v61 = vadd.f32 %v389_v57, %v1861_v50  ;;  %v406_v3 = vpack.c.bf16 %v400_v56, %v398_v60 }
 0x1f5   :  { %v391_v62 = vpop.f32.mrf.mxu1 }
 0x1f6   :  { %v407_v0 = vpack.c.bf16 %v401_v59, %v399_v58  ;;  %v392_v1 = vadd.f32 %v391_v62, %v1861_v50  ;;  %v402_v8 = vmax.f32 %v390_v61, 0.0  ;;  %v1966_v61 = vld [vmem:[%s2127_s4] sm:$0xf] }
 0x1f7   :  { %v393_v4 = vpop.f32.mrf.mxu1 }
 0x1f8   :  { %1323 = vmatprep.mubr.msk.bf16.mxu1 %vm243_vm0, %v407_v0  ;;  %v394_v6 = vadd.f32 %v393_v4, %v1868_v63  ;;  %v403_v9 = vmax.f32 %v392_v1, 0.0 }
 0x1f9   :  { %v395_v7 = vpop.f32.mrf.mxu1  ;;  %449 = vmatmul.mubr.bf16.vlgmr.msra.gmra.mxu1 %v406_v3 }
 0x1fa   :  { %v404_v10 = vmax.f32 %v394_v6, 0.0  ;;  %v396_v11 = vadd.f32 %v395_v7, %v1868_v63  ;;  %698 = vmatpush1.bf16.msra.mxu1 %v1871_v2 }
 0x1fb   :  { %699 = vmatprep.subr.bf16.mxu1 %v1873_v5 }
 0x1fc   :  { %v405_v14 = vmax.f32 %v396_v11, 0.0  ;;  %v408_v15 = vpack.c.bf16 %v404_v10, %v402_v8 }
 0x1fe   :  { %v409_v16 = vpack.c.bf16 %v405_v14, %v403_v9  ;;  %700 = vmatpush1.bf16.msra.mxu1 %v1879_v12 }
 0x1ff   :  { %701 = vmatprep.subr.bf16.mxu1 %v1882_v13 }
 0x200   :  { %1324 = vmatprep.mubr.msk.bf16.mxu1 %vm243_vm0, %v409_v16  ;;  %492 = vmatprep.subr.bf16.mxu0 %v409_v16 }
 0x201   :  { %459 = vmatmul.mubr.bf16.gmra.mxu1 %v408_v15  ;;  %493 = vmatpush1.bf16.msra.mxu0 %v408_v15 }
 0x202   :  { %702 = vmatpush1.bf16.msra.mxu1 %v1885_v17  ;;  %494 = vmatprep.subr.bf16.mxu0 %v407_v0 }
 0x203   :  { %703 = vmatprep.subr.bf16.mxu1 %v1888_v18  ;;  %1357 = vmatprep.mubr.msk.bf16.mxu1 %vm243_vm0, %v1893_v19 }
 0x205   :  { %495 = vmatpush1.bf16.msra.mxu0 %v406_v3 }
 0x206   :  { %704 = vmatpush1.bf16.msra.mxu1 %v1897_v20 }
 0x207   :  { %705 = vmatprep.subr.bf16.mxu1 %v1900_v21 }
 0x20a   :  { %706 = vmatpush1.bf16.msra.mxu1 %v1905_v22 }
 0x20b   :  { %707 = vmatprep.subr.bf16.mxu1 %v1908_v23 }
 0x20e   :  { %708 = vmatpush1.bf16.msra.mxu1 %v1911_v24 }
 0x20f   :  { %709 = vmatprep.subr.bf16.mxu1 %v1914_v25 }
 0x212   :  { %710 = vmatpush1.bf16.msra.mxu1 %v1917_v26 }
 0x213   :  { %711 = vmatprep.subr.bf16.mxu1 %v1920_v27 }
 0x216   :  { %712 = vmatpush1.bf16.msra.mxu1 %v1923_v29 }
 0x217   :  { %1356 = vmatprep.subr.msk.bf16.mxu1 %vm247_vm1, %v1926_v31 }
 0x21a   :  { %720 = vmatpush2.bf16.msra.mxu1 %v1932_v33 }
 0x21b   :  { %721 = vmatprep.subr.bf16.mxu1 %v1934_v34 }
 0x21e   :  { %722 = vmatpush2.bf16.msra.mxu1 %v1937_v35 }
 0x21f   :  { %723 = vmatprep.subr.bf16.mxu1 %v1940_v36 }
 0x222   :  { %724 = vmatpush2.bf16.msra.mxu1 %v1943_v37 }
 0x223   :  { %725 = vmatprep.subr.bf16.mxu1 %v1946_v38 }
 0x226   :  { %726 = vmatpush2.bf16.msra.mxu1 %v1949_v39 }
 0x227   :  { %727 = vmatprep.subr.bf16.mxu1 %v1952_v40 }
 0x22a   :  { %728 = vmatpush2.bf16.msra.mxu1 %v1955_v41 }
 0x22d   :  { %730 = vmatmul.mubr.bf16.vlgmr.msra.gmra.mxu1 %v1531_v46 }
 0x22e   :  { %903 = vmatprep.mubr.bf16.mxu1 %v1651_v30 }
 0x2b9   :  { %v450_v47 = vpop.f32.mrf.mxu1 }
 0x2bb   :  { %v452_v49 = vpop.f32.mrf.mxu1 }
 0x2bd   :  { %v454_v51 = vpop.f32.mrf.mxu1 }
 0x2be   :  { %v469_v60 = vpack.c.bf16 %v454_v51, %v450_v47 }
 0x2bf   :  { %v456_v52 = vpop.f32.mrf.mxu1 }
 0x2c0   :  { %v470_v59 = vpack.c.bf16 %v456_v52, %v452_v49 }
 0x2c1   :  { %v460_v53 = vpop.f32.mrf.mxu1 }
 0x2c3   :  { %v462_v54 = vpop.f32.mrf.mxu1 }
 0x2c5   :  { %v464_v55 = vpop.f32.mrf.mxu1 }
 0x2c6   :  { %v471_v56 = vpack.c.bf16 %v464_v55, %v460_v53 }
 0x2c7   :  { %v466_v57 = vpop.f32.mrf.mxu1 }
 0x2c8   :  { %v472_v58 = vpack.c.bf16 %v466_v57, %v462_v54 }
 0x2ca   :  { %496 = vmatprep.subr.bf16.mxu0 %v472_v58 }
 0x2cb   :  { %497 = vmatpush1.bf16.msra.mxu0 %v471_v56 }
 0x2cc   :  { %498 = vmatprep.subr.bf16.mxu0 %v470_v59 }
 0x2cf   :  { %499 = vmatpush1.bf16.msra.mxu0 %v469_v60 }
 0x2d0   :  { %755 = vmatprep.subr.bf16.mxu0 %v1893_v19 }
 0x2d2   :  { %1325 = vmatmul.mubr.msk.bf16.vlgmr.msra.gmra.mxu0 %vm480_vm3, %v1966_v61 }
 0x2d3   :  { %756 = vmatpush1.bf16.msra.mxu0 %v1531_v46  ;;  %775 = vmatprep.mubr.bf16.mxu0 %v1651_v30  ;;  %v1544_v46 = vld [vmem:[%s2129_s6 + $0x50] sm:$0xff]  }
 0x2ed   :  { %v731_v62 = vpop.f32.mrf.mxu1 }
 0x2ef   :  { %v733_v0 = vpop.f32.mrf.mxu1 }
 0x2f1   :  { %v735_v1 = vpop.f32.mrf.mxu1 }
 0x2f2   :  { %v740_v6 = vpack.c.bf16 %v735_v1, %v731_v62  ;;  %v1545_v62 = vld [vmem:[%s2129_s6 + $0x48] sm:$0xff]   ;;  %v1547_v1 = vld [vmem:[%s2131_s8 + $0x30] ss:$0 sps:$4 sm:$0x33]  }
 0x2f3   :  { %v737_v3 = vpop.f32.mrf.mxu1 }
 0x2f4   :  { %v741_v4 = vpack.c.bf16 %v737_v3, %v733_v0  ;;  %v1546_v0 = vld [vmem:[%s2129_s6 + $0x40] sm:$0xff]   ;;  %v1652_v3 = vmov 0.0  }
 0x2f6   :  { %757 = vmatprep.subr.bf16.mxu0 %v741_v4  ;;  %v1548_v4 = vld [vmem:[%s2131_s8 + $0x28] sm:$0xff]  }
 0x2f7   :  { %758 = vmatpush1.bf16.msra.mxu0 %v740_v6  ;;  %v1550_v6 = vld [vmem:[%s2131_s8 + $0x18] sm:$0xff]  }
 0x2f8   :  { %814 = vmatprep.subr.bf16.mxu0 %v1854_v44 }
 0x2fa   :  { %1358 = vmatmul.mubr.msk.bf16.vlgmr.msra.gmra.mxu0 %vm338_vm2, %v1823_v42 }
 0x2fb   :  { %785 = vmatprep.mubr.bf16.mxu0 %v1651_v30  ;;  %815 = vmatpush1.bf16.msra.mxu0 %v1871_v2 }
 0x2fc   :  { %816 = vmatprep.subr.bf16.mxu0 %v1873_v5 }
 0x2ff   :  { %817 = vmatpush1.bf16.msra.mxu0 %v1879_v12 }
 0x300   :  { %818 = vmatprep.subr.bf16.mxu0 %v1882_v13 }
 0x302   :  { %1359 = vmatmul.mubr.msk.bf16.gmra.mxu0 %vm338_vm2, %v1831_v43 }
 0x303   :  { %819 = vmatpush1.bf16.msra.mxu0 %v1885_v17 }
 0x304   :  { %820 = vmatprep.subr.bf16.mxu0 %v1888_v18 }
 0x307   :  { %821 = vmatpush1.bf16.msra.mxu0 %v1897_v20 }
 0x308   :  { %822 = vmatprep.subr.bf16.mxu0 %v1900_v21 }
 0x30b   :  { %823 = vmatpush1.bf16.msra.mxu0 %v1905_v22 }
 0x30c   :  { %824 = vmatprep.subr.bf16.mxu0 %v1908_v23 }
 0x30f   :  { %825 = vmatpush1.bf16.msra.mxu0 %v1911_v24 }
 0x310   :  { %826 = vmatprep.subr.bf16.mxu0 %v1914_v25 }
 0x313   :  { %827 = vmatpush1.bf16.msra.mxu0 %v1917_v26 }
 0x314   :  { %828 = vmatprep.subr.bf16.mxu0 %v1920_v27 }
 0x317   :  { %829 = vmatpush1.bf16.msra.mxu0 %v1923_v29 }
 0x318   :  { %1360 = vmatprep.subr.msk.bf16.mxu0 %vm247_vm1, %v1926_v31 }
 0x31b   :  { %837 = vmatpush2.bf16.msra.mxu0 %v1932_v33  ;;  %v1536_v33 = vld [vmem:[%s2129_s6 + $0x28] sm:$0xff]  }
 0x31c   :  { %838 = vmatprep.subr.bf16.mxu0 %v1934_v34  ;;  %v1537_v34 = vld [vmem:[%s2129_s6 + $0x20] sm:$0xff]  }
 0x31f   :  { %839 = vmatpush2.bf16.msra.mxu0 %v1937_v35  ;;  %v1538_v35 = vld [vmem:[%s2129_s6 + $0x18] sm:$0xff]  }
 0x320   :  { %840 = vmatprep.subr.bf16.mxu0 %v1940_v36  ;;  %v1539_v36 = vld [vmem:[%s2129_s6 + $0x10] sm:$0xff]  }
 0x323   :  { %841 = vmatpush2.bf16.msra.mxu0 %v1943_v37  ;;  %v1540_v37 = vld [vmem:[%s2129_s6 + $0x8] sm:$0xff]  }
 0x324   :  { %842 = vmatprep.subr.bf16.mxu0 %v1946_v38  ;;  %v1541_v38 = vld [vmem:[%s2129_s6] sm:$0xff]  }
 0x327   :  { %843 = vmatpush2.bf16.msra.mxu0 %v1949_v39  ;;  %v1542_v39 = vld [vmem:[%s2129_s6 + $0x60] ss:$0 sps:$4 sm:$0xff]  }
 0x328   :  { %844 = vmatprep.subr.bf16.mxu0 %v1952_v40  ;;  %v1025_v40 = vsel %vm247_vm1, %v1542_v39, 0 }
 0x32b   :  { %845 = vmatpush2.bf16.msra.mxu0 %v1955_v41  ;;  %v1543_v41 = vld [vmem:[%s2129_s6 + $0x58] sm:$0xff]  }
 0x32c   :  { %1027 = vmatprep.subr.bf16.mxu0 %v1651_v30 }
 0x392   :  { %v2005_v42 = vpop.f32.mrf.mxu0 }
 0x394   :  { %v2007_v43 = vpop.f32.mrf.mxu0 }
 0x396   :  { %v522_v44 = vpop.f32.mrf.mxu0 }
 0x398   :  { %v523_v2 = vpop.f32.mrf.mxu0 }
 0x399   :  { %v478_v2 = vpop.permute.xlu0 %477 }
 0x3ba   :  { %v777_v5 = vpop.f32.mrf.mxu0 }
 0x3bb   :  { %v778_v11 = vadd.f32 %v777_v5, %v1857_v45 }
 0x3bc   :  { %v779_v7 = vpop.f32.mrf.mxu0 }
 0x3bd   :  { %v780_v9 = vadd.f32 %v779_v7, %v1857_v45  ;;  %v796_v18 = vmax.f32 %v778_v11, 0.0 }
 0x3be   :  { %v781_v8 = vpop.f32.mrf.mxu0 }
 0x3bf   :  { %v782_v10 = vadd.f32 %v781_v8, %v1859_v48  ;;  %v797_v16 = vmax.f32 %v780_v9, 0.0  ;;  %v521_v8 = vadd.f32 %v2007_v43, %v478_v2  ;;  %v1552_v43 = vld [vmem:[%s2131_s8 + $0x8] sm:$0xff]  }
 0x3c0   :  { %v783_v12 = vpop.f32.mrf.mxu0 }
 0x3c1   :  { %v784_v13 = vadd.f32 %v783_v12, %v1859_v48  ;;  %v798_v14 = vmax.f32 %v782_v10, 0.0  ;;  %v519_v10 = vadd.f32 %v2005_v42, %v478_v2  ;;  %v1553_v42 = vld [vmem:[%s2131_s8] sm:$0xff]  }
 0x3c2   :  { %v787_v15 = vpop.f32.mrf.mxu0 }
 0x3c3   :  { %v799_v17 = vmax.f32 %v784_v13, 0.0  ;;  %v804_v21 = vpack.c.bf16 %v798_v14, %v796_v18  ;;  %v788_v45 = vadd.f32 %v787_v15, %v1861_v50  ;;  %v1551_v15 = vld [vmem:[%s2131_s8 + $0x10] sm:$0xff]  }
 0x3c4   :  { %v789_v19 = vpop.f32.mrf.mxu0 }
 0x3c5   :  { %v805_v20 = vpack.c.bf16 %v799_v17, %v797_v16  ;;  %v790_v23 = vadd.f32 %v789_v19, %v1861_v50  ;;  %v800_v29 = vmax.f32 %v788_v45, 0.0  ;;  %v1534_v50 = vld [vmem:[%s2129_s6 + $0x38] sm:$0xff]   ;;  %v1364_v16 = vld [vmem:[#allocation7] ss:$0 sm:$0xff] }
 0x3c6   :  { %v791_v22 = vpop.f32.mrf.mxu0 }
 0x3c7   :  { %v792_v24 = vadd.f32 %v791_v22, %v1868_v63  ;;  %1361 = vmatprep.mubr.msk.bf16.mxu0 %vm243_vm0, %v805_v20  ;;  %v801_v27 = vmax.f32 %v790_v23, 0.0  ;;  %v1554_v22 = vld [vmem:[%s2133_s10 + $0x18] ss:$0 sps:$4 sm:$0x11]  }
 0x3c8   :  { %v793_v25 = vpop.f32.mrf.mxu0  ;;  %847 = vmatmul.mubr.bf16.vlgmr.msra.gmra.mxu0 %v804_v21 }
 0x3c9   :  { %v794_v48 = vadd.f32 %v793_v25, %v1868_v63  ;;  %v802_v26 = vmax.f32 %v792_v24, 0.0  ;;  %1028 = vmatpush1.bf16.msra.mxu0 %v1534_v50  ;;  %v1535_v63 = vld [vmem:[%s2129_s6 + $0x30] sm:$0xff]  }
 0x3ca   :  { %1029 = vmatprep.subr.bf16.mxu0 %v1651_v30 }
 0x3cb   :  { %v803_v28 = vmax.f32 %v794_v48, 0.0  ;;  %v806_v32 = vpack.c.bf16 %v802_v26, %v800_v29  ;;  %v1223_v48 = vsel %vm1221_vm6, %v1554_v22, 0  ;;  %v1555_v26 = vld [vmem:[%s2133_s10 + $0x10] sm:$0xff]   ;;  %v1379_v29 = vld [vmem:[%s2132_s9] ss:$0 sm:$0xff]  ;;  %s1654_s9 = smov [#allocation8]  }
 0x3cd   :  { %v807_v31 = vpack.c.bf16 %v803_v28, %v801_v27  ;;  %1030 = vmatpush1.bf16.msra.mxu0 %v1535_v63  ;;  %v1556_v27 = vld [vmem:[%s2133_s10 + $0x8] sm:$0xff]   ;;  %v1557_v28 = vld [vmem:[%s2133_s10] sm:$0xff]   ;;  %s1275_s10 = sshll.u32 %s1654_s9, 4  ;;  %s1276_s10 = int_to_ptr.vmem [resolvable:$true] %s1275_s10 }
 0x3ce   :  { %1031 = vmatprep.subr.bf16.mxu0 %v1651_v30  ;;  %s1618_s7 = scalar_lea.vmem %s1276_s10, 256  ;;  %p1623_p2 = scmp.lt.s32.totalorder %s1276_s10, %s1276_s10 }
 0x3cf   :  { %1362 = vmatprep.mubr.msk.bf16.mxu0 %vm243_vm0, %v807_v31  ;;  %879 = vmatprep.subr.bf16.mxu1 %v807_v31  ;;  %p1619_p1 = scmp.ne.s32.totalorder %s1276_s10, %s1618_s7  ;;  %p1624_p3 = scmp.lt.s32.totalorder %s1618_s7, %s1618_s7 }
 0x3d0   :  { %857 = vmatmul.mubr.bf16.gmra.mxu0 %v806_v32  ;;  %880 = vmatpush1.bf16.msra.mxu1 %v806_v32 }
 0x3d1   :  { %881 = vmatprep.subr.bf16.mxu1 %v805_v20  ;;  %1032 = vmatpush1.bf16.msra.mxu0 %v1536_v33  ;;  %p1625_p4 = por %p1624_p3, %p1623_p2 }
 0x3d2   :  { %1033 = vmatprep.subr.bf16.mxu0 %v1651_v30 }
 0x3d3   :  { %p1626_p5 = pnand %p1625_p4, %p1619_p1 }
 0x3d4   :  { %882 = vmatpush1.bf16.msra.mxu1 %v804_v21 }
 0x3d5   :  { %1034 = vmatpush1.bf16.msra.mxu0 %v1537_v34 }
 0x3d6   :  { %1035 = vmatprep.subr.bf16.mxu0 %v1651_v30 }
 0x3d9   :  { %1036 = vmatpush1.bf16.msra.mxu0 %v1538_v35 }
 0x3da   :  { %1037 = vmatprep.subr.bf16.mxu0 %v1651_v30 }
 0x3dd   :  { %1038 = vmatpush1.bf16.msra.mxu0 %v1539_v36 }
 0x3de   :  { %1039 = vmatprep.subr.bf16.mxu0 %v1651_v30 }
 0x3e1   :  { %1040 = vmatpush1.bf16.msra.mxu0 %v1540_v37 }
 0x3e2   :  { %1041 = vmatprep.subr.bf16.mxu0 %v1651_v30 }
 0x3e5   :  { %1042 = vmatpush1.bf16.msra.mxu0 %v1541_v38  ;;  %v1388_v38 = vld [vmem:[%s2134_s11] ss:$0 sm:$0xff] }
 0x3e6   :  { %1049 = vmatprep.subr.bf16.mxu0 %v1651_v30 }
 0x3e9   :  { %1050 = vmatpush2.bf16.msra.mxu0 %v1025_v40 }
 0x3ea   :  { %1051 = vmatprep.subr.bf16.mxu0 %v1651_v30 }
 0x3ed   :  { %1052 = vmatpush2.bf16.msra.mxu0 %v1543_v41 }
 0x3ee   :  { %1053 = vmatprep.subr.bf16.mxu0 %v1651_v30 }
 0x3f1   :  { %1054 = vmatpush2.bf16.msra.mxu0 %v1544_v46 }
 0x3f2   :  { %1055 = vmatprep.subr.bf16.mxu0 %v1651_v30 }
 0x3f5   :  { %1056 = vmatpush2.bf16.msra.mxu0 %v1545_v62 }
 0x3f6   :  { %1057 = vmatprep.subr.bf16.mxu0 %v1651_v30  ;;  %v1549_v30 = vld [vmem:[%s2131_s8 + $0x20] sm:$0xff]  }
 0x3f9   :  { %1058 = vmatpush2.bf16.msra.mxu0 %v1546_v0 }
 0x488   :  { %v848_v47 = vpop.f32.mrf.mxu0 }
 0x48a   :  { %v850_v49 = vpop.f32.mrf.mxu0 }
 0x48c   :  { %v852_v51 = vpop.f32.mrf.mxu0 }
 0x48d   :  { %v867_v60 = vpack.c.bf16 %v852_v51, %v848_v47 }
 0x48e   :  { %v854_v52 = vpop.f32.mrf.mxu0 }
 0x48f   :  { %v868_v59 = vpack.c.bf16 %v854_v52, %v850_v49 }
 0x490   :  { %v858_v53 = vpop.f32.mrf.mxu0 }
 0x492   :  { %v860_v54 = vpop.f32.mrf.mxu0 }
 0x494   :  { %v862_v55 = vpop.f32.mrf.mxu0 }
 0x495   :  { %v869_v58 = vpack.c.bf16 %v862_v55, %v858_v53 }
 0x496   :  { %v864_v56 = vpop.f32.mrf.mxu0 }
 0x497   :  { %v870_v57 = vpack.c.bf16 %v864_v56, %v860_v54 }
 0x499   :  { %883 = vmatprep.subr.bf16.mxu1 %v870_v57 }
 0x49a   :  { %884 = vmatpush1.bf16.msra.mxu1 %v869_v58 }
 0x49b   :  { %885 = vmatprep.subr.bf16.mxu1 %v868_v59 }
 0x49e   :  { %886 = vmatpush1.bf16.msra.mxu1 %v867_v60 }
 0x49f   :  { %1407 = vmatprep.subr.bf16.mxu1 %v1652_v3 }
 0x4a1   :  { %1363 = vmatmul.mubr.msk.bf16.vlgmr.msra.gmra.mxu1 %vm480_vm3, %v1966_v61  ;;  %v1136_v61 = vsel %vm1134_vm4, %v1547_v1, 0 }
 0x4a2   :  { %1408 = vmatpush3.bf16.msra.mxu1 %v1136_v61  ;;  %1421 = vmatprep.mubr.msk.bf16.mxu1 %vm1653_vm5, %v1652_v3 }
 0x4a3   :  { %1409 = vmatprep.subr.bf16.mxu1 %v1652_v3 }
 0x4a6   :  { %1410 = vmatpush3.bf16.msra.mxu1 %v1548_v4 }
 0x4a7   :  { %1411 = vmatprep.subr.bf16.mxu1 %v1652_v3 }
 0x4aa   :  { %1412 = vmatpush3.bf16.msra.mxu1 %v1549_v30 }
 0x4ab   :  { %1413 = vmatprep.subr.bf16.mxu1 %v1652_v3 }
 0x4ae   :  { %1414 = vmatpush3.bf16.msra.mxu1 %v1550_v6 }
 0x4af   :  { %1415 = vmatprep.subr.bf16.mxu1 %v1652_v3 }
 0x4b2   :  { %1416 = vmatpush3.bf16.msra.mxu1 %v1551_v15 }
 0x4b3   :  { %1417 = vmatprep.subr.bf16.mxu1 %v1652_v3 }
 0x4b6   :  { %1418 = vmatpush3.bf16.msra.mxu1 %v1552_v43 }
 0x4b7   :  { %1419 = vmatprep.subr.bf16.mxu1 %v1652_v3 }
 0x4ba   :  { %1420 = vmatpush3.bf16.msra.mxu1 %v1553_v42 }
 0x4bb   :  { %1425 = vmatprep.subr.bf16.mxu1 %v1652_v3 }
 0x561   :  { %v905_v44 = vpop.f32.mrf.mxu1 }
 0x562   :  { %v906_v5 = vadd.f32 %v905_v44, %v478_v2 }
 0x563   :  { %v907_v7 = vpop.f32.mrf.mxu1 }
 0x564   :  { %v908_v9 = vadd.f32 %v907_v7, %v478_v2  ;;  %v912_v13 = vpack.c.bf16 %v906_v5, %v519_v10 }
 0x565   :  { %v909_v11 = vpop.f32.mrf.mxu1 }
 0x566   :  { %v913_v12 = vpack.c.bf16 %v908_v9, %v521_v8 }
 0x567   :  { %v910_v14 = vpop.f32.mrf.mxu1 }
 0x568   :  { %1378 = vmatprep.mubr.msk.bf16.mxu0 %vm243_vm0, %v913_v12 }
 0x569   :  { %1060 = vmatmul.mubr.bf16.vlgmr.msra.gmra.mxu0 %v912_v13 }
 0x629   :  { %v1061_v17 = vpop.f32.mrf.mxu0 }
 0x62a   :  { %v1062_v19 = vadd.f32 %v1364_v16, %v1061_v17 }
 0x62b   :  { %v1063_v18 = vpop.f32.mrf.mxu0 }
 0x62c   :  { %v1068_v24 = vmax.f32 %v1062_v19, 0.0 }
 0x62d   :  { %v1064_v20 = vpop.f32.mrf.mxu0 }
 0x62e   :  { %v1065_v21 = vadd.f32 %v1364_v16, %v1064_v20 }
 0x62f   :  { %v1066_v23 = vpop.f32.mrf.mxu0 }
 0x630   :  { %v1069_v45 = vmax.f32 %v1065_v21, 0.0 }
 0x632   :  { %v1070_v25 = vpack.c.bf16 %v1069_v45, %v1068_v24 }
 0x634   :  { %1422 = vmatmul.mubr.msk.bf16.vlgmr.msra.gmra.mxu1 %vm1130_vm7, %v1070_v25 }
 0x635   :  { %1426 = vmatpush3.bf16.msra.mxu1 %v1223_v48  ;;  %1433 = vmatprep.mubr.msk.bf16.mxu1 %vm1653_vm5, %v1652_v3 }
 0x636   :  { %1427 = vmatprep.subr.bf16.mxu1 %v1652_v3 }
 0x639   :  { %1428 = vmatpush3.bf16.msra.mxu1 %v1555_v26 }
 0x63a   :  { %1429 = vmatprep.subr.bf16.mxu1 %v1652_v3 }
 0x63d   :  { %1430 = vmatpush3.bf16.msra.mxu1 %v1556_v27 }
 0x63e   :  { %1431 = vmatprep.subr.bf16.mxu1 %v1652_v3 }
 0x641   :  { %1432 = vmatpush3.bf16.msra.mxu1 %v1557_v28 }
 0x6f4   :  { %v1172_v31 = vpop.f32.mrf.mxu1 }
 0x6f5   :  { %v1173_v50 = vadd.f32 %v1379_v29, %v1172_v31 }
 0x6f6   :  { %v1423_v32 = vpop.f32.mrf.mxu1 }
 0x6f7   :  { %v1179_v35 = vmax.f32 %v1173_v50, 0.0 }
 0x6f8   :  { %v1175_v63 = vpop.f32.mrf.mxu1 }
 0x6f9   :  { %v1176_v33 = vadd.f32 %v1379_v29, %v1175_v63 }
 0x6fa   :  { %v1424_v34 = vpop.f32.mrf.mxu1 }
 0x6fb   :  { %v1180_v36 = vmax.f32 %v1176_v33, 0.0 }
 0x6fd   :  { %v1181_v37 = vpack.c.bf16 %v1180_v36, %v1179_v35 }
 0x6ff   :  { %1434 = vmatmul.mubr.msk.bf16.vlgmr.msra.gmra.mxu1 %vm1217_vm8, %v1181_v37 }
 0x7bf   :  { %v1259_v39 = vpop.f32.mrf.mxu1 }
 0x7c0   :  { %v1260_v40 = vadd.f32 %v1388_v38, %v1259_v39 }
 0x7c1   :  { %v1435_v41 = vpop.f32.mrf.mxu1 }
 0x7c2   :  { %1267 = vst.msk [vmem:[#allocation8] sm:$0xff] %vm1266_vm9, %v1260_v40 }
 0x7c3   :  { %v1262_v46 = vpop.f32.mrf.mxu1 }
 0x7c4   :  { %v1263_v47 = vadd.f32 %v1388_v38, %v1262_v46 }
 0x7c5   :  { %v1436_v49 = vpop.f32.mrf.mxu1 }
 0x7c6   :  { %1269 = vst.msk [vmem:[#allocation8 + $0x8] sm:$0xff] %vm1266_vm9, %v1263_v47 }
 0x7c7   :  { %1629 = shalt.err (!%p1626_p5)
}
 0x7c8   :  { %1281 = dma.vmem_to_hbm [thread:$0]  %s1276_s10, 256, %s2135_s12, [#allocation4], %s1648_s13, %s1648_s13, %s1649_s14  }
 0x7c9   :  { %1642 = dma.done.wait [#allocation4], 256  }
 0x7ca   :  { %1643 = vsyncadd [#allocation4], 4294967040 }
 0x7cb   :  { %1285 = vsyncpa [#allocation3], 1 }
 0x7cc   :  { %1286 = vsyncpa [#allocation6], 1 }
 0x7cd   :  { %1287 = vsyncpa [#allocation4], 1 }

</bundles_post_ra>
